<compile_context>
chip_gen: v6e
topology: v6e:2x2x1
jax: 0.10.0
libtpu: 0.0.40
codegen_flags: <defaults>
</compile_context>

<pallas_src>
import functools

import jax
import jax.numpy as jnp
from jax import lax
from jax.experimental import pallas as pl
from jax.experimental.pallas import tpu as pltpu


def _round_up(x, m):
    return ((x + m - 1) // m) * m


def _vmem_capacity_bytes():
    """Physical VMEM per TensorCore (falls back to the smallest, v7x)."""
    try:
        info = pltpu.get_tpu_info()
        cap = getattr(info, "vmem_capacity_bytes", None)
        if cap:
            return int(cap)
    except Exception:
        pass
    return 64 * 1024 * 1024


def _per_lane_vmem_bytes(N, D):
    """Conservative VMEM bytes per edge lane inside one tile:
    streamed (1, TE) in/out channels (double-buffered) + two (N, TE) f32
    one-hots + ~three (D, TE) f32 gathered/temporary tiles."""
    return 48 + 8 * N + 12 * D


def _choose_edge_tile(N, D, E, tile_budget):
    e128 = _round_up(max(E, 1), 128)
    per_lane = _per_lane_vmem_bytes(N, D)
    tile = max(128, (tile_budget // per_lane) // 128 * 128)
    tile = min(tile, 8192, e128)
    # >= 4 grid steps when there is enough work (>= 2 per v7x TensorCore so
    # per-core double-buffering of the streamed channels stays intact);
    # >= 2 steps otherwise.
    if e128 >= 512:
        tile = min(tile, max(128, (e128 // 4) // 128 * 128))
    elif e128 >= 256:
        tile = min(tile, max(128, (e128 // 2) // 128 * 128))
    return tile


def _cosine_purification_kernel(featT_ref, row_ref, col_ref, nsq_ref, degc_ref,
                                score_ref, mask_ref, *, threshold,
                                allow_singleton):
    # featT_ref: (D, N) node features, transposed, VMEM-resident.
    # row_ref/col_ref: (1, TE) int32 edge endpoint indices (lane-dense).
    # nsq_ref: (1, TE) f32 per-edge product of squared node norms.
    # degc_ref: (1, TE) int32 in-degree of the destination node.
    # score_ref/mask_ref: (1, TE) lane-dense outputs.
    n_nodes = featT_ref.shape[1]
    te = row_ref.shape[1]

    # On-chip gather via one-hot selection matmul (MXU):
    #   oh[n, e] = 1 iff edge e's endpoint is node n
    #   featT (D, N) @ oh (N, TE) -> (D, TE) gathered features, edges on lanes.
    featT = featT_ref[...]
    node_iota = lax.broadcasted_iota(jnp.int32, (n_nodes, te), 0)
    oh_r = (node_iota == row_ref[...]).astype(featT.dtype)
    oh_c = (node_iota == col_ref[...]).astype(featT.dtype)
    a_t = jnp.dot(featT, oh_r, preferred_element_type=jnp.float32)   # (D, TE)
    b_t = jnp.dot(featT, oh_c, preferred_element_type=jnp.float32)   # (D, TE)

    dot = jnp.sum(a_t * b_t, axis=0, keepdims=True)                  # (1, TE)

    # F.cosine_similarity(..., eps=1e-8): x1.x2 / max(||x1||*||x2||, eps)
    #   == dot * rsqrt(max(||x1||^2 * ||x2||^2, eps^2))   (sqrt is monotone)
    eps2 = jnp.float32(1e-16)
    score = dot * lax.rsqrt(jnp.maximum(nsq_ref[...], eps2))
    score_ref[...] = score

    cond = score <= jnp.float32(threshold)
    if not allow_singleton:
        cond = jnp.logical_and(cond, degc_ref[...] > 1)
    mask_ref[...] = cond.astype(jnp.int32)


def cosine_purification(feat, row, col, *, threshold=0.0,
                        allow_singleton=False, edge_tile=None):
    """Returns (score[E], remove_mask[E] bool, removed_edges (2, E)).

    Mirrors graphwar CosinePurification.forward: `remove_mask[e]` is True for
    edges the PyTorch module would remove (score <= threshold and, unless
    allow_singleton, in_degree(col) > 1).
    """
    N, D = feat.shape
    E = row.shape[0]
    itemsize = jnp.dtype(feat.dtype).itemsize

    vmem_cap = _vmem_capacity_bytes()
    # ~32 MiB tile budget on 128-MiB parts (v5e/v6e), ~16 MiB on v7x (64 MiB).
    tile_budget = min(32 * 1024 * 1024, vmem_cap // 4)

    if edge_tile is None:
        edge_tile = _choose_edge_tile(N, D, E, tile_budget)
    assert edge_tile % 128 == 0

    Ep = _round_up(E, edge_tile)
    pad = Ep - E

    # --- cheap O(N*D + E) precomputation (no E*D HBM round trip) ------------
    feat_f32 = feat.astype(jnp.float32)
    sq = jnp.sum(feat_f32 * feat_f32, axis=1)               # per-node ||f||^2
    deg = jnp.zeros((N,), jnp.int32).at[col].add(1)         # g.in_degrees()

    row_p = jnp.pad(row.astype(jnp.int32), (0, pad)).reshape(1, Ep)
    col_p = jnp.pad(col.astype(jnp.int32), (0, pad)).reshape(1, Ep)
    nsq_p = jnp.pad(sq[row] * sq[col], (0, pad)).reshape(1, Ep)
    degc_p = jnp.pad(deg[col], (0, pad)).reshape(1, Ep)

    featT = feat.T                                           # (D, N)
    # TODO(synk): for graphs where feat^T does not fit in the VMEM budget
    # (N*D*itemsize >> tile_budget), switch featT to memory_space=pl.ANY and
    # DMA-gather the endpoint rows per tile instead of keeping it resident.

    kernel = functools.partial(_cosine_purification_kernel,
                               threshold=float(threshold),
                               allow_singleton=bool(allow_singleton))

    # Real footprint (+50% headroom), capped well below physical VMEM so
    # Mosaic internal scratch always has room (especially on v7x's 64 MiB).
    need = 2 * D * N * itemsize + edge_tile * _per_lane_vmem_bytes(N, D)
    vmem_limit = int(min(0.75 * vmem_cap, max(32 * 1024 * 1024, 1.5 * need)))

    grid = (Ep // edge_tile,)
    score, mask = pl.pallas_call(
        kernel,
        out_shape=(jax.ShapeDtypeStruct((1, Ep), jnp.float32),
                   jax.ShapeDtypeStruct((1, Ep), jnp.int32)),
        grid=grid,
        in_specs=[
            pl.BlockSpec((D, N), lambda i: (0, 0)),           # feat^T, resident
            pl.BlockSpec((1, edge_tile), lambda i: (0, i)),   # row ids
            pl.BlockSpec((1, edge_tile), lambda i: (0, i)),   # col ids
            pl.BlockSpec((1, edge_tile), lambda i: (0, i)),   # ||a||^2*||b||^2
            pl.BlockSpec((1, edge_tile), lambda i: (0, i)),   # in_degree(col)
        ],
        out_specs=(
            pl.BlockSpec((1, edge_tile), lambda i: (0, i)),
            pl.BlockSpec((1, edge_tile), lambda i: (0, i)),
        ),
        compiler_params=pltpu.CompilerParams(
            dimension_semantics=("parallel",),
            vmem_limit_bytes=vmem_limit),
    )(featT, row_p, col_p, nsq_p, degc_p)

    score = score[0, :E]
    remove_mask = mask[0, :E].astype(bool)

    # TODO(synk): g.remove_edges(e_id) / torch.where produce dynamic shapes;
    # return a boolean removal mask plus the (row, col) pairs with removed
    # edges kept in place (non-removed slots set to -1) instead.
    removed_edges = jnp.where(remove_mask[None, :],
                              jnp.stack([row, col], axis=0),
                              -1)
    return score, remove_mask, removed_edges


if __name__ == "__main__":
    base_key = jax.random.PRNGKey(0)

    def run_case(N, D, E, *, threshold, allow_singleton, case_id):
        k_feat, k_row, k_col = jax.random.split(
            jax.random.fold_in(base_key, case_id), 3)
        feat = jax.random.normal(k_feat, (N, D), dtype=jnp.float32)
        row = jax.random.randint(k_row, (E,), 0, N, dtype=jnp.int32)
        col = jax.random.randint(k_col, (E,), 0, N, dtype=jnp.int32)

        score, remove_mask, removed_edges = cosine_purification(
            feat, row, col, threshold=threshold,
            allow_singleton=allow_singleton)
        jax.block_until_ready((score, remove_mask, removed_edges))

        # Reference in plain JAX (same math as the torch.nn.functional path).
        a, b = feat[row], feat[col]
        dot = jnp.sum(a * b, axis=-1)
        ref_score = dot / jnp.maximum(
            jnp.linalg.norm(a, axis=-1) * jnp.linalg.norm(b, axis=-1), 1e-8)
        deg = jnp.zeros((N,), jnp.int32).at[col].add(1)
        ref_mask = ref_score <= threshold
        if not allow_singleton:
            ref_mask = jnp.logical_and(ref_mask, deg[col] > 1)

        assert jnp.allclose(score, ref_score, atol=1e-5, rtol=1e-5)
        assert jnp.array_equal(remove_mask, ref_mask)

    # Small case (single tile, padding).
    run_case(16, 32, 64, threshold=0.0, allow_singleton=False, case_id=0)
    # Multi-tile grid + non-8/128-aligned N, D + non-zero threshold.
    run_case(50, 40, 300, threshold=0.25, allow_singleton=False, case_id=1)

    print("KERNEL_OK")
</pallas_src>

<mosaic_0001>
module attributes {stable_mosaic.version = 11 : i64} {
  func.func @_cosine_purification_kernel(%arg0: i32, %arg1: memref<32x16xf32, #tpu.memory_space<vmem>>, %arg2: memref<1x128xi32, #tpu.memory_space<vmem>>, %arg3: memref<1x128xi32, #tpu.memory_space<vmem>>, %arg4: memref<1x128xf32, #tpu.memory_space<vmem>>, %arg5: memref<1x128xi32, #tpu.memory_space<vmem>>, %arg6: memref<1x128xf32, #tpu.memory_space<vmem>>, %arg7: memref<1x128xi32, #tpu.memory_space<vmem>>) attributes {dimension_semantics = [#tpu.dimension_semantics<parallel>], iteration_bounds = array<i64: 1>, scalar_prefetch = 0 : i64, scratch_operands = 0 : i64, tpu.core_type = #tpu.core_type<tc>, window_params = [{pipeline_mode = #tpu.pipeline_mode<synchronous>, transform_indices = @transform_0, window_bounds = array<i64: 32, 16>}, {transform_indices = @transform_1, window_bounds = array<i64: 1, 128>}, {transform_indices = @transform_2, window_bounds = array<i64: 1, 128>}, {transform_indices = @transform_3, window_bounds = array<i64: 1, 128>}, {transform_indices = @transform_4, window_bounds = array<i64: 1, 128>}, {transform_indices = @transform_5, window_bounds = array<i64: 1, 128>}, {transform_indices = @transform_6, window_bounds = array<i64: 1, 128>}]} {
    %c0 = arith.constant 0 : index
    %c0_0 = arith.constant 0 : index
    %0 = vector.load %arg1[%c0, %c0_0] : memref<32x16xf32, #tpu.memory_space<vmem>>, vector<32x16xf32>
    %1 = tpu.iota {dimensions = array<i32: 0>} : vector<16x128xi32>
    %c0_1 = arith.constant 0 : index
    %c0_2 = arith.constant 0 : index
    %2 = vector.load %arg2[%c0_1, %c0_2] : memref<1x128xi32, #tpu.memory_space<vmem>>, vector<1x128xi32>
    %3 = vector.broadcast %2 : vector<1x128xi32> to vector<16x128xi32>
    %4 = arith.cmpi eq, %1, %3 : vector<16x128xi32>
    %5 = arith.extui %4 : vector<16x128xi1> to vector<16x128xi32>
    %6 = arith.sitofp %5 : vector<16x128xi32> to vector<16x128xf32>
    %c0_3 = arith.constant 0 : index
    %c0_4 = arith.constant 0 : index
    %7 = vector.load %arg3[%c0_3, %c0_4] : memref<1x128xi32, #tpu.memory_space<vmem>>, vector<1x128xi32>
    %8 = vector.broadcast %7 : vector<1x128xi32> to vector<16x128xi32>
    %9 = arith.cmpi eq, %1, %8 : vector<16x128xi32>
    %10 = arith.extui %9 : vector<16x128xi1> to vector<16x128xi32>
    %11 = arith.sitofp %10 : vector<16x128xi32> to vector<16x128xf32>
    %cst = arith.constant dense<0.000000e+00> : vector<32x128xf32>
    %12 = tpu.matmul %0, %6, %cst {dimension_numbers = #tpu.dot_dimension_numbers<[1], [0], [0], [1], [0, 0, 1, 1], [], []>} : vector<32x16xf32>, vector<16x128xf32>, vector<32x128xf32> -> vector<32x128xf32>
    %cst_5 = arith.constant dense<0.000000e+00> : vector<32x128xf32>
    %13 = tpu.matmul %0, %11, %cst_5 {dimension_numbers = #tpu.dot_dimension_numbers<[1], [0], [0], [1], [0, 0, 1, 1], [], []>} : vector<32x16xf32>, vector<16x128xf32>, vector<32x128xf32> -> vector<32x128xf32>
    %14 = arith.mulf %12, %13 : vector<32x128xf32>
    %cst_6 = arith.constant dense<0.000000e+00> : vector<128xf32>
    %15 = vector.multi_reduction <add>, %14, %cst_6 [0] : vector<32x128xf32> to vector<128xf32>
    %16 = vector.shape_cast %15 : vector<128xf32> to vector<1x128xf32>
    %c0_7 = arith.constant 0 : index
    %c0_8 = arith.constant 0 : index
    %17 = vector.load %arg4[%c0_7, %c0_8] : memref<1x128xf32, #tpu.memory_space<vmem>>, vector<1x128xf32>
    %cst_9 = arith.constant 1.000000e-16 : f32
    %18 = vector.broadcast %cst_9 : f32 to vector<1x128xf32>
    %19 = arith.maximumf %17, %18 : vector<1x128xf32>
    %20 = math.rsqrt %19 : vector<1x128xf32>
    %21 = arith.mulf %16, %20 : vector<1x128xf32>
    %c0_10 = arith.constant 0 : index
    %c0_11 = arith.constant 0 : index
    %22 = vector.load %arg6[%c0_10, %c0_11] : memref<1x128xf32, #tpu.memory_space<vmem>>, vector<1x128xf32>
    tpu.vector_store %arg6[%c0_10, %c0_11], %21 {strides = array<i32>} : memref<1x128xf32, #tpu.memory_space<vmem>>, vector<1x128xf32>,
    %cst_12 = arith.constant 0.000000e+00 : f32
    %23 = vector.broadcast %cst_12 : f32 to vector<1x128xf32>
    %24 = arith.cmpf ole, %21, %23 : vector<1x128xf32>
    %c0_13 = arith.constant 0 : index
    %c0_14 = arith.constant 0 : index
    %25 = vector.load %arg5[%c0_13, %c0_14] : memref<1x128xi32, #tpu.memory_space<vmem>>, vector<1x128xi32>
    %c1_i32 = arith.constant 1 : i32
    %26 = vector.broadcast %c1_i32 : i32 to vector<1x128xi32>
    %27 = arith.cmpi sgt, %25, %26 : vector<1x128xi32>
    %28 = arith.andi %24, %27 : vector<1x128xi1>
    %29 = arith.extui %28 : vector<1x128xi1> to vector<1x128xi32>
    %c0_15 = arith.constant 0 : index
    %c0_16 = arith.constant 0 : index
    %30 = vector.load %arg7[%c0_15, %c0_16] : memref<1x128xi32, #tpu.memory_space<vmem>>, vector<1x128xi32>
    tpu.vector_store %arg7[%c0_15, %c0_16], %29 {strides = array<i32>} : memref<1x128xi32, #tpu.memory_space<vmem>>, vector<1x128xi32>,
    return
  }
  func.func @transform_0(%arg0: i32) -> (i32, i32) {
    %c0_i32 = arith.constant 0 : i32
    %c0_i32_0 = arith.constant 0 : i32
    %c0_i32_1 = arith.constant 0 : i32
    return %c0_i32, %c0_i32_0 : i32, i32
  }
  func.func @transform_1(%arg0: i32) -> (i32, i32) {
    %c0_i32 = arith.constant 0 : i32
    %c0_i32_0 = arith.constant 0 : i32
    return %c0_i32, %arg0 : i32, i32
  }
  func.func @transform_2(%arg0: i32) -> (i32, i32) {
    %c0_i32 = arith.constant 0 : i32
    %c0_i32_0 = arith.constant 0 : i32
    return %c0_i32, %arg0 : i32, i32
  }
  func.func @transform_3(%arg0: i32) -> (i32, i32) {
    %c0_i32 = arith.constant 0 : i32
    %c0_i32_0 = arith.constant 0 : i32
    return %c0_i32, %arg0 : i32, i32
  }
  func.func @transform_4(%arg0: i32) -> (i32, i32) {
    %c0_i32 = arith.constant 0 : i32
    %c0_i32_0 = arith.constant 0 : i32
    return %c0_i32, %arg0 : i32, i32
  }
  func.func @transform_5(%arg0: i32) -> (i32, i32) {
    %c0_i32 = arith.constant 0 : i32
    %c0_i32_0 = arith.constant 0 : i32
    return %c0_i32, %arg0 : i32, i32
  }
  func.func @transform_6(%arg0: i32) -> (i32, i32) {
    %c0_i32 = arith.constant 0 : i32
    %c0_i32_0 = arith.constant 0 : i32
    return %c0_i32, %arg0 : i32, i32
  }
}

</mosaic_0001>

<bundles_post_ra>
// kernel: tpu_custom_call.1
= control target key start
LH: loop header
LB: loop body
LE: loop exit
PB: predicated region body
PF: predicated region fallthrough
CT: control target
= control target key end

     0   :  { %12 = vsyncpa [#allocation3], 0  ;;  %v28_v0 = vlaneseq  ;;  %vm53_vm0 = vcmask 130048   ;;  %s465_s0 = inlined_call_operand.vmem [shape: f32[32,16], index: 0, kind: input, shape index: {}]   ;;  %s466_s1 = inlined_call_operand.vmem [shape: s32[1,128], index: 1, kind: input, shape index: {}]   ;;  %s467_s2 = inlined_call_operand.vmem [shape: s32[1,128], index: 2, kind: input, shape index: {}]   ;;  %s468_s3 = inlined_call_operand.vmem [shape: f32[1,128], index: 3, kind: input, shape index: {}]   ;;  %s469_s4 = inlined_call_operand.vmem [shape: s32[1,128], index: 4, kind: input, shape index: {}]   ;;  %s470_s5 = inlined_call_operand.hbm [shape: f32[1,128], index: 5, kind: output, shape index: {0}]   ;;  %s471_s6 = inlined_call_operand.hbm [shape: s32[1,128], index: 6, kind: output, shape index: {1}]  }
   0x1   :  { %v24_v1 = vld [vmem:[%s465_s0] sm:$0xff] }
   0x2   :  { %v29_v2 = vshrl.u32 %v28_v0, 7  ;;  %322 = vmatprep.mubr.msk.f32.mxu0 %vm53_vm0, %v24_v1  ;;  %332 = vmatprep.mubr.msk.f32.mxu1 %vm53_vm0, %v24_v1 }
   0x3   :  { %13 = vsyncpa [#allocation5], 0  ;;  %v288_v3 = vld [vmem:[%s466_s1] ss:$0 sm:$0xff]  ;;  %v388_v6 = vmov 1.0   ;;  %v25_v7 = vld [vmem:[%s465_s0 + $0x8] sm:$0xff] }
   0x4   :  { %v291_v4 = vld [vmem:[%s467_s2] ss:$0 sm:$0xff]  ;;  %v30_v5 = vadd.s32 8, %v29_v2  ;;  %vm36_vm1 = vcmp.eq.s32.totalorder %v29_v2, %v288_v3  ;;  %v26_v8 = vld [vmem:[%s465_s0 + $0x10] sm:$0xff]  ;;  %v27_v9 = vld [vmem:[%s465_s0 + $0x18] sm:$0xff]  ;;  %s389_s0 = smov [#allocation2]  }
   0x5   :  { %vm47_vm3 = vcmp.eq.s32.totalorder %v29_v2, %v291_v4  ;;  %v249_v14 = vld [vmem:[%s468_s3] sm:$0x1]  ;;  %s266_s3 = sshll.u32 %s389_s0, 4  ;;  %s390_s11 = smov [#allocation4]   ;;  %s267_s3 = int_to_ptr.vmem [resolvable:$true] %s266_s3 }
   0x6   :  { %vm37_vm2 = vcmp.eq.s32.totalorder %v30_v5, %v288_v3  ;;  %vm48_vm4 = vcmp.eq.s32.totalorder %v30_v5, %v291_v4  ;;  %v250_v19 = vmax.f32 %v249_v14, 1e-16  ;;  %v255_v33 = vld [vmem:[%s469_s4] sm:$0x1]  ;;  %s276_s12 = sshll.u32 %s390_s11, 4  ;;  %s344_s13 = scalar_lea.vmem %s267_s3, 16  ;;  %s277_s12 = int_to_ptr.vmem [resolvable:$true] %s276_s12 }
   0x7   :  { %318 = vmatprep.subr.msk.mxu0 %vm37_vm2, %v388_v6  ;;  %328 = vmatprep.subr.msk.mxu1 %vm48_vm4, %v388_v6  ;;  %vm256_vm5 = vcmp.gt.s32.totalorder %v255_v33, 1  ;;  %p345_p0 = scmp.ne.s32.totalorder %s267_s3, %s344_s13  ;;  %s348_s14 = scalar_lea.vmem %s267_s3, 32 }
   0x8   :  { %319 = vmatpush3.msk.msra.mxu0 %vm37_vm2, %v388_v6  ;;  %329 = vmatpush3.msk.msra.mxu1 %vm48_vm4, %v388_v6  ;;  %342 = vrsqrt.f32 %v250_v19  ;;  %p349_p1 = scmp.lt.s32.totalorder %s267_s3, %s267_s3  ;;  %p350_p2 = scmp.lt.s32.totalorder %s348_s14, %s344_s13 }
   0x9   :  { %320 = vmatprep.subr.msk.mxu0 %vm36_vm1, %v388_v6  ;;  %330 = vmatprep.subr.msk.mxu1 %vm47_vm3, %v388_v6 }
   0xa   :  { %321 = vmatpush3.msk.msra.mxu0 %vm36_vm1, %v388_v6  ;;  %331 = vmatpush3.msk.msra.mxu1 %vm47_vm3, %v388_v6  ;;  %p351_p3 = por %p350_p2, %p349_p1 }
   0xb   :  { %323 = vmatmul.mubr.msk.f32.vlgmr.msra.gmra.mxu0 %vm53_vm0, %v25_v7  ;;  %333 = vmatmul.mubr.msk.f32.vlgmr.msra.gmra.mxu1 %vm53_vm0, %v25_v7 }
   0xc   :  { %325 = vmatprep.mubr.msk.f32.mxu0 %vm53_vm0, %v26_v8  ;;  %335 = vmatprep.mubr.msk.f32.mxu1 %vm53_vm0, %v26_v8  ;;  %p352_p4 = pnand %p351_p3, %p345_p0 }
   0xf   :  { %326 = vmatmul.mubr.msk.f32.gmra.mxu0 %vm53_vm0, %v27_v9  ;;  %336 = vmatmul.mubr.msk.f32.gmra.mxu1 %vm53_vm0, %v27_v9 }
  0x15   :  { %v343_v32 = vpop.eup %342 }
  0xcb   :  { %v324_v10 = vpop.f32.mrf.mxu0  ;;  %v334_v11 = vpop.f32.mrf.mxu1 }
  0xcc   :  { %v237_v18 = vmul.f32 %v334_v11, %v324_v10 }
  0xcd   :  { %v132_v12 = vpop.f32.mrf.mxu0  ;;  %v217_v13 = vpop.f32.mrf.mxu1 }
  0xce   :  { %v236_v15 = vmul.f32 %v217_v13, %v132_v12 }
  0xcf   :  { %v327_v16 = vpop.f32.mrf.mxu0  ;;  %v337_v17 = vpop.f32.mrf.mxu1 }
  0xd0   :  { %v240_v22 = vadd.f32 %v237_v18, %v236_v15  ;;  %v239_v24 = vmul.f32 %v337_v17, %v327_v16 }
  0xd1   :  { %v142_v20 = vpop.f32.mrf.mxu0  ;;  %v227_v21 = vpop.f32.mrf.mxu1 }
  0xd2   :  { %v238_v23 = vmul.f32 %v227_v21, %v142_v20 }
  0xd4   :  { %v241_v25 = vadd.f32 %v240_v22, %v238_v23 }
  0xd6   :  { %v242_v26 = vadd.f32 %v241_v25, %v239_v24 }
  0xd8   :  { %v243_v27 = vrot.slane %v242_v26, 4 }
  0xda   :  { %v244_v28 = vadd.f32 %v243_v27, %v242_v26 }
  0xdc   :  { %v245_v29 = vrot.slane %v244_v28, 2 }
  0xde   :  { %v246_v30 = vadd.f32 %v245_v29, %v244_v28 }
  0xe0   :  { %v247_v31 = vrot.slane %v246_v30, 1 }
  0xe2   :  { %v248_v34 = vadd.f32 %v247_v31, %v246_v30 }
  0xe4   :  { %v252_v35 = vmul.f32 %v343_v32, %v248_v34 }
  0xe6   :  { %253 = vst [vmem:[#allocation2] sm:$0x1] %v252_v35  ;;  %vm254_vm6 = vcmp.le.f32.partialorder %v252_v35, 0.0 }
  0xe7   :  { %355 = shalt.err (!%p352_p4)
}
  0xe8   :  { %269 = dma.vmem_to_hbm [thread:$0]  %s267_s3, 16, %s470_s5, [#allocation3]   ;;  %vm257_vm7 = vmand %vm254_vm6, %vm256_vm5  ;;  %v391_v36 = vmov 0  }
  0xe9   :  { %v258_v37 = vsel %vm257_vm7, 1, %v391_v36  ;;  %s364_s4 = scalar_lea.vmem %s277_s12, 16  ;;  %s368_s17 = scalar_lea.vmem %s277_s12, 32 }
  0xea   :  { %259 = vst [vmem:[#allocation4] sm:$0x1] %v258_v37  ;;  %p365_p5 = scmp.ne.s32.totalorder %s277_s12, %s364_s4  ;;  %p369_p6 = scmp.lt.s32.totalorder %s277_s12, %s277_s12 }
  0xeb   :  { %p370_p7 = scmp.lt.s32.totalorder %s368_s17, %s364_s4 }
  0xed   :  { %p371_p8 = por %p370_p7, %p369_p6 }
  0xef   :  { %p372_p9 = pnand %p371_p8, %p365_p5 }
  0xf1   :  { %375 = shalt.err (!%p372_p9)
}
  0xf2   :  { %279 = dma.vmem_to_hbm [thread:$0]  %s277_s12, 16, %s471_s6, [#allocation5]  }
  0xf3   :  { %384 = dma.done.wait [#allocation3], 16  }
  0xf4   :  { %385 = vsyncadd [#allocation3], 4294967280 }
  0xf5   :  { %386 = dma.done.wait [#allocation5], 16  }
  0xf6   :  { %387 = vsyncadd [#allocation5], 4294967280 }
  0xf7   :  { %286 = vsyncpa [#allocation3], 1 }
  0xf8   :  { %287 = vsyncpa [#allocation5], 1 }

</bundles_post_ra>
